<compile_context>
chip_gen: v7x
topology: tpu7x:2x2x1
jax: 0.10.0
libtpu: 0.0.40
codegen_flags: <defaults>
</compile_context>

<pallas_src>
import jax
import jax.numpy as jnp
from jax.experimental import pallas as pl
from jax.experimental.pallas import tpu as pltpu

H = 25           # hidden width
HP = 32          # hidden width padded to a sublane multiple (VMEM-internal)
IN_DIM = 2       # (t, x)
OUT_DIM = 4
OUTP = 8         # output rows padded to a sublane multiple (sliced off outside)
LANE = 128       # batch maps to lanes; tiles are multiples of 128
MAX_TM = 2048    # max batch-lane tile (sweepable); VMEM footprint is tiny


def _aux_net_kernel(tx_ref,     # [2, TM]    f32  (row 0 = t, row 1 = x)
                    w1_ref,     # [HP, 2]    cdtype (col 0 = t weights, col 1 = x)
                    w2_ref,     # [HP, HP]   cdtype (W2^T, zero padded)
                    w3_ref,     # [HP, HP]   cdtype (W3^T, zero padded)
                    wo_ref,     # [OUTP, HP] cdtype (Wo^T, zero padded)
                    b_ref,      # [HP, 4]    f32  (column l = layer-l bias)
                    o_ref):     # [OUTP, TM] f32
    f32 = jnp.float32
    cdtype = w2_ref.dtype       # compute dtype (f32 default, bf16 opt-in)

    t_row = tx_ref[0:1, :]                         # [1, TM]
    x_row = tx_ref[1:2, :]                         # [1, TM]

    # Layer 1 (fan-in 2) on the VPU: two broadcast multiply-adds instead of a
    # mostly-dead MXU matmul.  Padded sublanes of w1/b -> 0, tanh(0) = 0.
    z = (w1_ref[:, 0:1].astype(f32) * t_row
         + w1_ref[:, 1:2].astype(f32) * x_row
         + b_ref[:, 0:1])                          # [HP, TM] f32
    h = jnp.tanh(z.astype(cdtype))

    # Layers 2, 3: [32,32] x [32,TM] MXU matmuls with f32 accumulation;
    # bias add in f32, tanh in the compute dtype (bf16 EUP on v6e/v7x).
    z = jnp.dot(w2_ref[...], h, preferred_element_type=f32) + b_ref[:, 1:2]
    h = jnp.tanh(z.astype(cdtype))
    z = jnp.dot(w3_ref[...], h, preferred_element_type=f32) + b_ref[:, 2:3]
    h = jnp.tanh(z.astype(cdtype))

    # Output layer: only the 8 (padded from 4) valid output rows are computed,
    # and the store is lane-dense (batch on lanes).
    out = jnp.dot(wo_ref[...], h, preferred_element_type=f32) + b_ref[0:OUTP, 3:4]
    o_ref[...] = out.astype(o_ref.dtype)


def _round_up(n, m):
    return ((n + m - 1) // m) * m


def _cdiv(a, b):
    return (a + b - 1) // b


def prepare_params(params, compute_dtype=jnp.float32):
    """Pad + transpose weights ONCE into MXU/VPU-friendly shapes.

    `params` = ((w1, b1), (w2, b2), (w3, b3), (wo, bo)) with weights stored
    [in, out] (transposed vs. PyTorch's [out, in]) and biases [out].
    Returns (w1p [HP,2], w2p [HP,HP], w3p [HP,HP], wop [OUTP,HP], b_all [HP,4]).
    Weights are stored in `compute_dtype` (f32 default; bf16 opt-in on v6e/v7x);
    biases stay f32 (added after the f32 accumulation).
    """
    (w1, b1), (w2, b2), (w3, b3), (wo, bo) = params
    assert w1.shape == (IN_DIM, H) and b1.shape == (H,)
    assert w2.shape == (H, H) and b2.shape == (H,)
    assert w3.shape == (H, H) and b3.shape == (H,)
    assert wo.shape == (H, OUT_DIM) and bo.shape == (OUT_DIM,)

    def pad_t(w, rows, cols):   # store W^T ([out, in]), zero padded
        out = jnp.zeros((rows, cols), jnp.float32)
        out = out.at[: w.shape[1], : w.shape[0]].set(w.astype(jnp.float32).T)
        return out.astype(compute_dtype)

    w1p = pad_t(w1, HP, IN_DIM)
    w2p = pad_t(w2, HP, HP)
    w3p = pad_t(w3, HP, HP)
    wop = pad_t(wo, OUTP, HP)

    b_all = jnp.zeros((HP, 4), jnp.float32)
    b_all = b_all.at[:H, 0].set(b1.astype(jnp.float32))
    b_all = b_all.at[:H, 1].set(b2.astype(jnp.float32))
    b_all = b_all.at[:H, 2].set(b3.astype(jnp.float32))
    b_all = b_all.at[:OUT_DIM, 3].set(bo.astype(jnp.float32))
    return (w1p, w2p, w3p, wop, b_all)


@jax.jit
def aux_net_forward(t, x, padded_params):
    """t, x: [N] or [N,1] float arrays. padded_params from prepare_params().
    Returns [N, 4] float32."""
    if t.ndim > 1:
        t = t.reshape(-1)
    if x.ndim > 1:
        x = x.reshape(-1)
    t = t.astype(jnp.float32)
    x = x.astype(jnp.float32)
    n = t.shape[0]
    tx = jnp.stack([t, x], axis=0)                     # [2, N]

    # Batch-on-lanes tiling: tm is a multiple of 128.  For n > 128 the grid is
    # split into an even number of equal-size steps so the "parallel" axis
    # shards evenly across v7x's two TensorCores (harmless on v5e/v6e).
    n128 = _round_up(max(n, 1), LANE)
    if n128 <= LANE:
        tm = LANE
    else:
        steps = max(2, _cdiv(n128, MAX_TM))
        if steps % 2:
            steps += 1
        tm = min(_round_up(_cdiv(n, steps), LANE), MAX_TM)
    grid_steps = _cdiv(n, tm)
    n_pad = grid_steps * tm
    if n_pad != n:
        tx = jnp.pad(tx, ((0, 0), (0, n_pad - n)))

    (w1p, w2p, w3p, wop, b_all) = padded_params

    tx_spec = pl.BlockSpec((IN_DIM, tm), lambda i: (0, i))
    # Parameter index_maps are constant across the grid -> fetched once and
    # kept resident in VMEM (no per-step weight DMA).
    w1_spec = pl.BlockSpec((HP, IN_DIM), lambda i: (0, 0))
    w_spec = pl.BlockSpec((HP, HP), lambda i: (0, 0))
    wo_spec = pl.BlockSpec((OUTP, HP), lambda i: (0, 0))
    b_spec = pl.BlockSpec((HP, 4), lambda i: (0, 0))
    o_spec = pl.BlockSpec((OUTP, tm), lambda i: (0, i))

    out = pl.pallas_call(
        _aux_net_kernel,
        out_shape=jax.ShapeDtypeStruct((OUTP, n_pad), jnp.float32),
        grid_spec=pltpu.PrefetchScalarGridSpec(
            num_scalar_prefetch=0,
            grid=(grid_steps,),
            in_specs=[tx_spec, w1_spec, w_spec, w_spec, wo_spec, b_spec],
            out_specs=o_spec,
        ),
        compiler_params=pltpu.CompilerParams(
            dimension_semantics=("parallel",)),
    )(tx, w1p, w2p, w3p, wop, b_all)

    # [OUTP, n_pad] -> [N, 4]: one tiny transpose/slice outside the kernel.
    return out[:OUT_DIM, :n].T


def init_params(key):
    """Deterministic init mimicking nn.Linear default (uniform +-1/sqrt(fan_in)).
    Weights stored as [in, out]."""
    dims = [(IN_DIM, H), (H, H), (H, H), (H, OUT_DIM)]
    params = []
    for (fan_in, fan_out) in dims:
        key, kw, kb = jax.random.split(key, 3)
        bound = 1.0 / jnp.sqrt(fan_in)
        w = jax.random.uniform(kw, (fan_in, fan_out), jnp.float32,
                               -bound, bound)
        b = jax.random.uniform(kb, (fan_out,), jnp.float32, -bound, bound)
        params.append((w, b))
    return tuple(params)


def reference_forward(t, x, params):
    if t.ndim == 1:
        t = t[:, None]
    if x.ndim == 1:
        x = x[:, None]
    h = jnp.concatenate([t, x], axis=1).astype(jnp.float32)
    (w1, b1), (w2, b2), (w3, b3), (wo, bo) = params
    h = jnp.tanh(h @ w1 + b1)
    h = jnp.tanh(h @ w2 + b2)
    h = jnp.tanh(h @ w3 + b3)
    return h @ wo + bo


if __name__ == "__main__":
    key = jax.random.PRNGKey(0)
    kp, kt, kx = jax.random.split(key, 3)
    params = init_params(kp)
    padded_f32 = prepare_params(params)                    # default f32 path

    # Small case (single 128-lane tile, one grid step).
    N = 8
    t = jax.random.normal(kt, (N,), jnp.float32)
    x = jax.random.normal(kx, (N,), jnp.float32)
    out = jax.block_until_ready(aux_net_forward(t, x, padded_f32))
    ref = reference_forward(t, x, params)
    assert out.shape == (N, OUT_DIM)
    err = jnp.max(jnp.abs(out - ref))
    assert jnp.allclose(out, ref, atol=1e-4, rtol=1e-4), (
        f"f32 small-N max abs err {err}")

    # Larger case exercising the balanced multi-step grid (2 x 384-lane tiles).
    N2 = 600
    t2 = jax.random.normal(kt, (N2,), jnp.float32)
    x2 = jax.random.normal(kx, (N2,), jnp.float32)
    out2 = jax.block_until_ready(aux_net_forward(t2, x2, padded_f32))
    ref2 = reference_forward(t2, x2, params)
    assert out2.shape == (N2, OUT_DIM)
    err2 = jnp.max(jnp.abs(out2 - ref2))
    assert jnp.allclose(out2, ref2, atol=1e-4, rtol=1e-4), (
        f"f32 large-N max abs err {err2}")

    # Opt-in bf16 compute path (targets v6e/v7x bf16 EUP/MXU; f32 accumulate).
    padded_bf16 = prepare_params(params, compute_dtype=jnp.bfloat16)
    out_bf16 = jax.block_until_ready(aux_net_forward(t2, x2, padded_bf16))
    assert out_bf16.shape == (N2, OUT_DIM)
    err_bf16 = jnp.max(jnp.abs(out_bf16 - ref2))
    assert err_bf16 < 0.1, f"bf16 max abs err {err_bf16}"

    print("KERNEL_OK")
</pallas_src>

<mosaic_0001>
module attributes {stable_mosaic.version = 11 : i64} {
  func.func @_aux_net_kernel(%arg0: i32, %arg1: memref<2x128xf32, #tpu.memory_space<vmem>>, %arg2: memref<32x2xf32, #tpu.memory_space<vmem>>, %arg3: memref<32x32xf32, #tpu.memory_space<vmem>>, %arg4: memref<32x32xf32, #tpu.memory_space<vmem>>, %arg5: memref<8x32xf32, #tpu.memory_space<vmem>>, %arg6: memref<32x4xf32, #tpu.memory_space<vmem>>, %arg7: memref<8x128xf32, #tpu.memory_space<vmem>>) attributes {dimension_semantics = [#tpu.dimension_semantics<parallel>], iteration_bounds = array<i64: 1>, scalar_prefetch = 0 : i64, scratch_operands = 0 : i64, tpu.core_type = #tpu.core_type<tc>, window_params = [{transform_indices = @transform_0, window_bounds = array<i64: 2, 128>}, {pipeline_mode = #tpu.pipeline_mode<synchronous>, transform_indices = @transform_1, window_bounds = array<i64: 32, 2>}, {pipeline_mode = #tpu.pipeline_mode<synchronous>, transform_indices = @transform_2, window_bounds = array<i64: 32, 32>}, {pipeline_mode = #tpu.pipeline_mode<synchronous>, transform_indices = @transform_3, window_bounds = array<i64: 32, 32>}, {pipeline_mode = #tpu.pipeline_mode<synchronous>, transform_indices = @transform_4, window_bounds = array<i64: 8, 32>}, {pipeline_mode = #tpu.pipeline_mode<synchronous>, transform_indices = @transform_5, window_bounds = array<i64: 32, 4>}, {transform_indices = @transform_6, window_bounds = array<i64: 8, 128>}]} {
    %c0 = arith.constant 0 : index
    %c0_0 = arith.constant 0 : index
    %0 = vector.load %arg1[%c0, %c0_0] : memref<2x128xf32, #tpu.memory_space<vmem>>, vector<1x128xf32>
    %c1 = arith.constant 1 : index
    %c0_1 = arith.constant 0 : index
    %1 = vector.load %arg1[%c1, %c0_1] : memref<2x128xf32, #tpu.memory_space<vmem>>, vector<1x128xf32>
    %c0_2 = arith.constant 0 : index
    %c0_3 = arith.constant 0 : index
    %2 = vector.load %arg2[%c0_2, %c0_3] : memref<32x2xf32, #tpu.memory_space<vmem>>, vector<32x1xf32>
    %3 = vector.broadcast %2 : vector<32x1xf32> to vector<32x128xf32>
    %4 = vector.broadcast %0 : vector<1x128xf32> to vector<32x128xf32>
    %5 = arith.mulf %3, %4 : vector<32x128xf32>
    %c0_4 = arith.constant 0 : index
    %c1_5 = arith.constant 1 : index
    %6 = vector.load %arg2[%c0_4, %c1_5] : memref<32x2xf32, #tpu.memory_space<vmem>>, vector<32x1xf32>
    %7 = vector.broadcast %6 : vector<32x1xf32> to vector<32x128xf32>
    %8 = vector.broadcast %1 : vector<1x128xf32> to vector<32x128xf32>
    %9 = arith.mulf %7, %8 : vector<32x128xf32>
    %10 = arith.addf %5, %9 : vector<32x128xf32>
    %c0_6 = arith.constant 0 : index
    %c0_7 = arith.constant 0 : index
    %11 = vector.load %arg6[%c0_6, %c0_7] : memref<32x4xf32, #tpu.memory_space<vmem>>, vector<32x1xf32>
    %12 = vector.broadcast %11 : vector<32x1xf32> to vector<32x128xf32>
    %13 = arith.addf %10, %12 : vector<32x128xf32>
    %14 = math.tanh %13 : vector<32x128xf32>
    %c0_8 = arith.constant 0 : index
    %c0_9 = arith.constant 0 : index
    %15 = vector.load %arg3[%c0_8, %c0_9] : memref<32x32xf32, #tpu.memory_space<vmem>>, vector<32x32xf32>
    %cst = arith.constant dense<0.000000e+00> : vector<32x128xf32>
    %16 = tpu.matmul %15, %14, %cst {dimension_numbers = #tpu.dot_dimension_numbers<[1], [0], [0], [1], [0, 0, 1, 1], [], []>} : vector<32x32xf32>, vector<32x128xf32>, vector<32x128xf32> -> vector<32x128xf32>
    %c0_10 = arith.constant 0 : index
    %c1_11 = arith.constant 1 : index
    %17 = vector.load %arg6[%c0_10, %c1_11] : memref<32x4xf32, #tpu.memory_space<vmem>>, vector<32x1xf32>
    %18 = vector.broadcast %17 : vector<32x1xf32> to vector<32x128xf32>
    %19 = arith.addf %16, %18 : vector<32x128xf32>
    %20 = math.tanh %19 : vector<32x128xf32>
    %c0_12 = arith.constant 0 : index
    %c0_13 = arith.constant 0 : index
    %21 = vector.load %arg4[%c0_12, %c0_13] : memref<32x32xf32, #tpu.memory_space<vmem>>, vector<32x32xf32>
    %cst_14 = arith.constant dense<0.000000e+00> : vector<32x128xf32>
    %22 = tpu.matmul %21, %20, %cst_14 {dimension_numbers = #tpu.dot_dimension_numbers<[1], [0], [0], [1], [0, 0, 1, 1], [], []>} : vector<32x32xf32>, vector<32x128xf32>, vector<32x128xf32> -> vector<32x128xf32>
    %c0_15 = arith.constant 0 : index
    %c2 = arith.constant 2 : index
    %23 = vector.load %arg6[%c0_15, %c2] : memref<32x4xf32, #tpu.memory_space<vmem>>, vector<32x1xf32>
    %24 = vector.broadcast %23 : vector<32x1xf32> to vector<32x128xf32>
    %25 = arith.addf %22, %24 : vector<32x128xf32>
    %26 = math.tanh %25 : vector<32x128xf32>
    %c0_16 = arith.constant 0 : index
    %c0_17 = arith.constant 0 : index
    %27 = vector.load %arg5[%c0_16, %c0_17] : memref<8x32xf32, #tpu.memory_space<vmem>>, vector<8x32xf32>
    %cst_18 = arith.constant dense<0.000000e+00> : vector<8x128xf32>
    %28 = tpu.matmul %27, %26, %cst_18 {dimension_numbers = #tpu.dot_dimension_numbers<[1], [0], [0], [1], [0, 0, 1, 1], [], []>} : vector<8x32xf32>, vector<32x128xf32>, vector<8x128xf32> -> vector<8x128xf32>
    %c0_19 = arith.constant 0 : index
    %c3 = arith.constant 3 : index
    %29 = vector.load %arg6[%c0_19, %c3] : memref<32x4xf32, #tpu.memory_space<vmem>>, vector<8x1xf32>
    %30 = vector.broadcast %29 : vector<8x1xf32> to vector<8x128xf32>
    %31 = arith.addf %28, %30 : vector<8x128xf32>
    %c0_20 = arith.constant 0 : index
    %c0_21 = arith.constant 0 : index
    %32 = vector.load %arg7[%c0_20, %c0_21] : memref<8x128xf32, #tpu.memory_space<vmem>>, vector<8x128xf32>
    tpu.vector_store %arg7[%c0_20, %c0_21], %31 {strides = array<i32>} : memref<8x128xf32, #tpu.memory_space<vmem>>, vector<8x128xf32>,
    return
  }
  func.func @transform_0(%arg0: i32) -> (i32, i32) {
    %c0_i32 = arith.constant 0 : i32
    %c0_i32_0 = arith.constant 0 : i32
    return %c0_i32, %arg0 : i32, i32
  }
  func.func @transform_1(%arg0: i32) -> (i32, i32) {
    %c0_i32 = arith.constant 0 : i32
    %c0_i32_0 = arith.constant 0 : i32
    %c0_i32_1 = arith.constant 0 : i32
    return %c0_i32, %c0_i32_0 : i32, i32
  }
  func.func @transform_2(%arg0: i32) -> (i32, i32) {
    %c0_i32 = arith.constant 0 : i32
    %c0_i32_0 = arith.constant 0 : i32
    %c0_i32_1 = arith.constant 0 : i32
    return %c0_i32, %c0_i32_0 : i32, i32
  }
  func.func @transform_3(%arg0: i32) -> (i32, i32) {
    %c0_i32 = arith.constant 0 : i32
    %c0_i32_0 = arith.constant 0 : i32
    %c0_i32_1 = arith.constant 0 : i32
    return %c0_i32, %c0_i32_0 : i32, i32
  }
  func.func @transform_4(%arg0: i32) -> (i32, i32) {
    %c0_i32 = arith.constant 0 : i32
    %c0_i32_0 = arith.constant 0 : i32
    %c0_i32_1 = arith.constant 0 : i32
    return %c0_i32, %c0_i32_0 : i32, i32
  }
  func.func @transform_5(%arg0: i32) -> (i32, i32) {
    %c0_i32 = arith.constant 0 : i32
    %c0_i32_0 = arith.constant 0 : i32
    %c0_i32_1 = arith.constant 0 : i32
    return %c0_i32, %c0_i32_0 : i32, i32
  }
  func.func @transform_6(%arg0: i32) -> (i32, i32) {
    %c0_i32 = arith.constant 0 : i32
    %c0_i32_0 = arith.constant 0 : i32
    return %c0_i32, %arg0 : i32, i32
  }
}

</mosaic_0001>

<bundles_post_ra>
// kernel: aux_net_forward.1
= control target key start
LH: loop header
LB: loop body
LE: loop exit
PB: predicated region body
PF: predicated region fallthrough
CT: control target
= control target key end

     0   :  { %v580_v0 = vmov 1   ;;  %v581_v4 = vmov 0   ;;  %vm137_vm0 = vcmask 261120   ;;  %v582_v51 = vmov 2   ;;  %s712_s1 = inlined_call_operand.vmem [shape: f32[32,2], index: 1, kind: input, shape index: {}]   ;;  %s713_s5 = inlined_call_operand.vmem [shape: f32[32,4], index: 5, kind: input, shape index: {}]   ;;  %s714_s2 = inlined_call_operand.vmem [shape: f32[32,32], index: 2, kind: input, shape index: {}]   ;;  %s715_s0 = inlined_call_operand.vmem [shape: f32[2,128], index: 0, kind: input, shape index: {}]   ;;  %s716_s3 = inlined_call_operand.vmem [shape: f32[32,32], index: 3, kind: input, shape index: {}]   ;;  %s717_s4 = inlined_call_operand.vmem [shape: f32[8,32], index: 4, kind: input, shape index: {}]   ;;  %s718_s6 = inlined_call_operand.vmem [shape: f32[8,128], index: 6, kind: output, shape index: {}]  }
   0x1   :  { %547 = vset.pattern.permute.xlu0 %v580_v0  ;;  %545 = vset.pattern.permute.xlu1 %v580_v0  ;;  %v27_v1 = vld [vmem:[%s712_s1 + $0x10] sm:$0xff]  ;;  %v25_v2 = vld [vmem:[%s712_s1] sm:$0xff]  ;;  %v26_v3 = vld [vmem:[%s712_s1 + $0x8] sm:$0xff]  ;;  %vm584_vm1 = vmmov 0  }
   0x2   :  { %66 = vperm.xlu0 %547, %v27_v1   ;;  %58 = vperm.xlu1 %545, %v25_v2   ;;  %v28_v5 = vld [vmem:[%s712_s1 + $0x18] sm:$0xff]  ;;  %v637_v6 = vld [vmem:[%s713_s5 + $0x8] sm:$0xff]  ;;  %v642_v7 = vld [vmem:[%s713_s5] sm:$0xff] }
   0x3   :  { %v649_v8 = vld [vmem:[%s713_s5 + $0x10] sm:$0xff]  ;;  %v656_v9 = vld [vmem:[%s713_s5 + $0x18] sm:$0xff]  ;;  %v117_v10 = vld [vmem:[%s714_s2] sm:$0xff] }
   0x4   :  { %485 = vmatprep.mubr.msk.f32.mxu0 %vm137_vm0, %v117_v10  ;;  %v445_v17 = vld [vmem:[%s715_s0] ss:$0 sm:$0xff]  ;;  %v446_v19 = vld [vmem:[%s715_s0 + $0x1] ss:$0 sm:$0xff]  ;;  %v118_v47 = vld [vmem:[%s714_s2 + $0x8] sm:$0xff]  ;;  %v583_v10 = vmov 0.0|0.0  }
   0x5   :  { %v119_v48 = vld [vmem:[%s714_s2 + $0x10] sm:$0xff]  ;;  %v120_v49 = vld [vmem:[%s714_s2 + $0x18] sm:$0xff]  ;;  %v239_v50 = vld [vmem:[%s716_s3] sm:$0xff] }
   0x6   :  { %548 = vset.pattern.permute.xlu0 %v581_v4  ;;  %62 = vperm.xlu1 %545, %v26_v3  }
   0x7   :  { %31 = vperm.xlu0 %548, %v25_v2   ;;  %499 = vmatprep.mubr.msk.f32.mxu1 %vm137_vm0, %v239_v50 }
   0xa   :  { %546 = vset.pattern.permute.xlu1 %v581_v4 }
   0xb   :  { %36 = vperm.xlu0 %548, %v26_v3   ;;  %46 = vperm.xlu1 %546, %v28_v5  }
   0xf   :  { %41 = vperm.xlu0 %548, %v27_v1   ;;  %549 = vset.pattern.permute.xlu1 %v580_v0 }
  0x10   :  { %70 = vperm.xlu1 %549, %v28_v5  }
  0x13   :  { %96 = vperm.xlu0 %548, %v637_v6  }
  0x14   :  { %550 = vset.pattern.permute.xlu1 %v581_v4 }
  0x15   :  { %91 = vperm.xlu1 %550, %v642_v7  }
  0x17   :  { %551 = vset.pattern.permute.xlu0 %v580_v0 }
  0x18   :  { %122 = vperm.xlu0 %551, %v642_v7  }
  0x19   :  { %101 = vperm.xlu1 %550, %v649_v8  }
  0x1c   :  { %134 = vperm.xlu0 %551, %v656_v9  }
  0x1d   :  { %106 = vperm.xlu1 %550, %v656_v9  }
  0x20   :  { %554 = vset.pattern.permute.xlu0 %v582_v51 }
  0x21   :  { %552 = vset.pattern.permute.xlu1 %v580_v0  ;;  %248 = vperm.xlu0 %554, %v637_v6  }
  0x22   :  { %126 = vperm.xlu1 %552, %v637_v6   ;;  %v240_v6 = vld [vmem:[%s716_s3 + $0x8] sm:$0xff] }
  0x26   :  { %130 = vperm.xlu1 %552, %v649_v8  }
  0x2a   :  { %553 = vset.pattern.permute.xlu1 %v582_v51 }
  0x2b   :  { %244 = vperm.xlu1 %553, %v642_v7  }
  0x2f   :  { %252 = vperm.xlu1 %553, %v649_v8   ;;  %v241_v8 = vld [vmem:[%s716_s3 + $0x10] sm:$0xff] }
  0x33   :  { %256 = vperm.xlu1 %553, %v656_v9   ;;  %v242_v9 = vld [vmem:[%s716_s3 + $0x18] sm:$0xff] }
  0x81   :  { %v59_v11 = vpop.permute.xlu1 %58  ;;  %v67_v12 = vpop.permute.xlu0 %66 }
  0x82   :  { %v77_v24 = vmul.f32 %v446_v19, %v59_v11  ;;  %v79_v32 = vmul.f32 %v446_v19, %v67_v12  ;;  %v585_v11 = vmov 0.0   ;;  %v586_v12 = vmov 3  }
  0x83   :  { %555 = vset.pattern.permute.xlu0 %v586_v12 }
  0x84   :  { %364 = vperm.xlu0 %555, %v642_v7  }
  0x85   :  { %v63_v13 = vpop.permute.xlu1 %62 }
  0x86   :  { %v32_v14 = vpop.permute.xlu0 %31  ;;  %v78_v21 = vmul.f32 %v446_v19, %v63_v13 }
  0x87   :  { %v53_v22 = vmul.f32 %v445_v17, %v32_v14 }
  0x89   :  { %v81_v28 = vadd.f32 %v77_v24, %v53_v22 }
  0x8a   :  { %v37_v15 = vpop.permute.xlu0 %36  ;;  %v47_v16 = vpop.permute.xlu1 %46 }
  0x8b   :  { %v54_v18 = vmul.f32 %v445_v17, %v37_v15  ;;  %v56_v36 = vmul.f32 %v445_v17, %v47_v16 }
  0x8d   :  { %v82_v25 = vadd.f32 %v78_v21, %v54_v18 }
  0x8e   :  { %v42_v20 = vpop.permute.xlu0 %41 }
  0x8f   :  { %v71_v23 = vpop.permute.xlu1 %70  ;;  %v55_v29 = vmul.f32 %v445_v17, %v42_v20 }
  0x90   :  { %v80_v33 = vmul.f32 %v446_v19, %v71_v23 }
  0x91   :  { %v83_v35 = vadd.f32 %v79_v32, %v55_v29 }
  0x92   :  { %v97_v26 = vpop.permute.xlu0 %96  ;;  %v84_v38 = vadd.f32 %v80_v33, %v56_v36 }
  0x93   :  { %v110_v27 = vadd.f32 %v97_v26, %v82_v25 }
  0x94   :  { %v92_v30 = vpop.permute.xlu1 %91 }
  0x95   :  { %v109_v31 = vadd.f32 %v92_v30, %v81_v28  ;;  %556 = vtanh.f32 %v110_v27  ;;  %v360_v30 = vld [vmem:[%s717_s4] sm:$0xff] }
  0x97   :  { %558 = vtanh.f32 %v109_v31  ;;  %v123_v52 = vpop.permute.xlu0 %122 }
  0x98   :  { %v102_v34 = vpop.permute.xlu1 %101 }
  0x99   :  { %v111_v37 = vadd.f32 %v102_v34, %v83_v35 }
  0x9b   :  { %560 = vtanh.f32 %v111_v37  ;;  %v135_v58 = vpop.permute.xlu0 %134 }
  0x9c   :  { %v107_v39 = vpop.permute.xlu1 %106 }
  0x9d   :  { %v112_v40 = vadd.f32 %v107_v39, %v84_v38 }
  0x9f   :  { %562 = vtanh.f32 %v112_v40  ;;  %v557_v41 = vpop.eup %556 }
  0xa0   :  { %v249_v15 = vpop.permute.xlu0 %248 }
  0xa1   :  { %v559_v42 = vpop.eup %558  ;;  %v127_v53 = vpop.permute.xlu1 %126 }
  0xa2   :  { %v516_v43 = vpack.c.bf16 %v557_v41, %v559_v42 }
  0xa4   :  { %517 = vmatprep.subr.bf16.mxu0 %v516_v43 }
  0xa5   :  { %519 = vmatpush3.bf16.msra.mxu0 %v516_v43  ;;  %v561_v44 = vpop.eup %560  ;;  %v131_v60 = vpop.permute.xlu1 %130 }
  0xa9   :  { %v563_v45 = vpop.eup %562 }
  0xaa   :  { %v520_v46 = vpack.c.bf16 %v563_v45, %v561_v44  ;;  %v245_v13 = vpop.permute.xlu1 %244 }
  0xac   :  { %521 = vmatprep.subr.bf16.mxu0 %v520_v46 }
  0xad   :  { %523 = vmatpush3.bf16.msra.mxu0 %v520_v46 }
  0xae   :  { %532 = vmatprep.subr.bf16.mxu0 %v583_v10  ;;  %v253_v14 = vpop.permute.xlu1 %252 }
  0xb0   :  { %486 = vmatmul.mubr.msk.f32.vlgmr.msra.gmra.mrb[0].mxu0 %vm137_vm0, %v118_v47 }
  0xb1   :  { %488 = vmatprep.mubr.msk.f32.mxu0 %vm137_vm0, %v119_v48 }
  0xb2   :  { %v257_v20 = vpop.permute.xlu1 %256 }
  0xb4   :  { %489 = vmatmul.mubr.msk.f32.gmra.mrb[2].mxu0 %vm137_vm0, %v120_v49 }
  0xb5   :  { %513 = vmatprep.mubr.msk.f32.mxu0 %vm584_vm1, %v585_v11 }
 0x103   :  { %v365_v31 = vpop.permute.xlu0 %364 }
 0x183   :  { %v487_v54 = vpop.f32.mrb[0].mxu0 }
 0x184   :  { %v222_v55 = vadd.f32 %v487_v54, %v127_v53  ;;  %v216_v56 = vpop.f32.mrb[1].mxu0 }
 0x185   :  { %v217_v57 = vadd.f32 %v216_v56, %v123_v52 }
 0x186   :  { %564 = vtanh.f32 %v222_v55 }
 0x187   :  { %566 = vtanh.f32 %v217_v57  ;;  %v490_v59 = vpop.f32.mrb[2].mxu0 }
 0x188   :  { %v232_v61 = vadd.f32 %v490_v59, %v135_v58  ;;  %v226_v62 = vpop.f32.mrb[3].mxu0 }
 0x189   :  { %v227_v63 = vadd.f32 %v226_v62, %v131_v60 }
 0x18a   :  { %568 = vtanh.f32 %v232_v61 }
 0x18b   :  { %570 = vtanh.f32 %v227_v63 }
 0x190   :  { %v565_v0 = vpop.eup %564 }
 0x191   :  { %v567_v1 = vpop.eup %566 }
 0x192   :  { %v524_v2 = vpack.c.bf16 %v565_v0, %v567_v1 }
 0x194   :  { %v569_v3 = vpop.eup %568  ;;  %525 = vmatprep.subr.bf16.mxu1 %v524_v2 }
 0x195   :  { %v571_v4 = vpop.eup %570  ;;  %527 = vmatpush3.bf16.msra.mxu1 %v524_v2 }
 0x196   :  { %v528_v5 = vpack.c.bf16 %v569_v3, %v571_v4 }
 0x198   :  { %529 = vmatprep.subr.bf16.mxu1 %v528_v5 }
 0x199   :  { %531 = vmatpush3.bf16.msra.mxu1 %v528_v5 }
 0x19c   :  { %500 = vmatmul.mubr.msk.f32.vlgmr.msra.gmra.mrb[0].mxu1 %vm137_vm0, %v240_v6 }
 0x19d   :  { %502 = vmatprep.mubr.msk.f32.mxu1 %vm137_vm0, %v241_v8 }
 0x1a0   :  { %503 = vmatmul.mubr.msk.f32.gmra.mrb[2].mxu1 %vm137_vm0, %v242_v9 }
 0x26f   :  { %v501_v16 = vpop.f32.mrb[0].mxu1 }
 0x270   :  { %v343_v17 = vadd.f32 %v501_v16, %v249_v15  ;;  %v337_v18 = vpop.f32.mrb[1].mxu1 }
 0x271   :  { %v338_v19 = vadd.f32 %v337_v18, %v245_v13 }
 0x272   :  { %572 = vtanh.f32 %v343_v17 }
 0x273   :  { %574 = vtanh.f32 %v338_v19  ;;  %v504_v21 = vpop.f32.mrb[2].mxu1 }
 0x274   :  { %v353_v22 = vadd.f32 %v504_v21, %v257_v20  ;;  %v347_v23 = vpop.f32.mrb[3].mxu1 }
 0x275   :  { %v348_v24 = vadd.f32 %v347_v23, %v253_v14 }
 0x276   :  { %576 = vtanh.f32 %v353_v22 }
 0x277   :  { %578 = vtanh.f32 %v348_v24 }
 0x27c   :  { %v573_v25 = vpop.eup %572 }
 0x27d   :  { %v575_v26 = vpop.eup %574 }
 0x27e   :  { %v533_v27 = vpack.c.bf16 %v573_v25, %v575_v26 }
 0x280   :  { %v577_v7 = vpop.eup %576  ;;  %534 = vmatpush3.bf16.msra.mxu0 %v533_v27 }
 0x281   :  { %v579_v28 = vpop.eup %578  ;;  %535 = vmatprep.subr.bf16.mxu0 %v583_v10 }
 0x282   :  { %v536_v29 = vpack.c.bf16 %v577_v7, %v579_v28 }
 0x284   :  { %537 = vmatpush3.bf16.msra.mxu0 %v536_v29 }
 0x287   :  { %514 = vmatmul.mubr.msk.f32.vlgmr.msra.gmra.mrb[4].mxu0 %vm137_vm0, %v360_v30 }
 0x35a   :  { %v436_v32 = vpop.f32.mrb[4].mxu0 }
 0x35b   :  { %v437_v33 = vadd.f32 %v436_v32, %v365_v31  ;;  %v515_v34 = vpop.f32.mrb[5].mxu0 }
 0x35d   :  { %440 = vst [vmem:[%s718_s6] sm:$0xff] %v437_v33 }

</bundles_post_ra>
